<compile_context>
chip_gen: v5e
topology: v5e:2x2
jax: 0.10.0
libtpu: 0.0.40
codegen_flags: <defaults>
</compile_context>

<pallas_src>
import jax
import jax.numpy as jnp
from jax.experimental import pallas as pl
from jax.experimental.pallas import tpu as pltpu

_LANES = 512   # lane-dense last dim (multiple of 128) -> unmasked dense stores
_TM = 512      # rows per tile for large inputs: tile = 512*512*4 B = 1 MiB
               # (x + out, double-buffered ~= 4 MiB -> safely under v7x's 64 MiB VMEM)


def _linear11_kernel(w_ref, b_ref, x_ref, o_ref):
    # w_ref / b_ref: (1, 1) scalars in SMEM.  x_ref / o_ref: (tile_rows, _LANES) VMEM tiles.
    w = w_ref[0, 0]
    b = b_ref[0, 0]
    # Explicit astype keeps the store a plain dense vst even if o is not f32.
    o_ref[...] = (w * x_ref[...] + b).astype(o_ref.dtype)


def _pick_tiling(m: int):
    """Return (rows_total, tile_rows) for a flattened input of m elements."""
    tile_elems = _TM * _LANES
    if m <= tile_elems:
        # Tiny input: a single sublane-aligned tile (no pipelining needed).
        rows = max(8, -(-m // _LANES))        # cdiv
        rows = ((rows + 7) // 8) * 8          # align to 8 sublanes
        return rows, rows
    n_tiles = -(-m // tile_elems)             # cdiv
    return n_tiles * _TM, _TM


def linear11_forward(x: jax.Array, weight: jax.Array, bias: jax.Array) -> jax.Array:
    """Pallas equivalent of nn.Linear(1, 1): y = x @ W.T + b for x[..., 1]."""
    assert x.shape[-1] == 1, "nn.Linear(in_features=1) expects last dim == 1"
    orig_shape = x.shape
    orig_dtype = x.dtype

    w2 = weight.reshape(1, 1).astype(jnp.float32)
    b2 = bias.reshape(1, 1).astype(jnp.float32)

    # Flatten + pad to a lane-dense (rows_total, _LANES) slab.
    flat = x.reshape(-1).astype(jnp.float32)
    m = flat.shape[0]
    rows_total, tile_rows = _pick_tiling(m)
    padded = rows_total * _LANES
    if padded != m:
        flat = jnp.pad(flat, (0, padded - m))
    x2 = flat.reshape(rows_total, _LANES)

    grid = (rows_total // tile_rows,)

    y2 = pl.pallas_call(
        _linear11_kernel,
        out_shape=jax.ShapeDtypeStruct((rows_total, _LANES), jnp.float32),
        grid_spec=pltpu.PrefetchScalarGridSpec(
            num_scalar_prefetch=0,
            grid=grid,
            in_specs=[
                pl.BlockSpec(memory_space=pltpu.MemorySpace.SMEM),   # weight (1,1)
                pl.BlockSpec(memory_space=pltpu.MemorySpace.SMEM),   # bias   (1,1)
                pl.BlockSpec((tile_rows, _LANES), lambda i: (i, 0)),  # x tile
            ],
            out_specs=pl.BlockSpec((tile_rows, _LANES), lambda i: (i, 0)),
        ),
        compiler_params=pltpu.CompilerParams(
            # Row tiles are fully independent -> megacore sharding on v7x,
            # measured-neutral on single-TC v5e/v6e.
            dimension_semantics=("parallel",),
            # Headroom over the default scoped VMEM; still under v7x's 64 MiB.
            vmem_limit_bytes=48 * 1024 * 1024,
        ),
    )(w2, b2, x2)

    # Strip padding and restore the original [..., 1] shape / dtype.
    return y2.reshape(-1)[:m].reshape(orig_shape).astype(orig_dtype)


if __name__ == "__main__":
    key = jax.random.PRNGKey(0)
    k_x, k_w, k_b = jax.random.split(key, 3)

    # nn.Linear(1, 1) parameters (deterministic, mirroring PyTorch's U(-1, 1) init
    # for in_features=1): weight (1, 1), bias (1,).
    weight = jax.random.uniform(k_w, (1, 1), dtype=jnp.float32, minval=-1.0, maxval=1.0)
    bias = jax.random.uniform(k_b, (1,), dtype=jnp.float32, minval=-1.0, maxval=1.0)

    # Small input consistent with the module: trailing feature dim of 1.
    x = jax.random.normal(k_x, (2, 4, 16, 1), dtype=jnp.float32)

    y = linear11_forward(x, weight, bias)
    jax.block_until_ready(y)

    # Pure-JAX reference with the same semantics as nn.Linear(1, 1).
    y_ref = x * weight[0, 0] + bias[0]
    assert y.shape == x.shape, "output shape mismatch"
    assert jnp.allclose(y, y_ref, atol=1e-6, rtol=1e-6), "mismatch vs reference"

    print("KERNEL_OK")
</pallas_src>

<mosaic_0001>
module attributes {stable_mosaic.version = 11 : i64} {
  func.func @_linear11_kernel(%arg0: i32, %arg1: memref<1x1xf32, #tpu.memory_space<smem>>, %arg2: memref<1x1xf32, #tpu.memory_space<smem>>, %arg3: memref<8x512xf32, #tpu.memory_space<vmem>>, %arg4: memref<8x512xf32, #tpu.memory_space<vmem>>) attributes {dimension_semantics = [#tpu.dimension_semantics<parallel>], iteration_bounds = array<i64: 1>, scalar_prefetch = 0 : i64, scratch_operands = 0 : i64, tpu.core_type = #tpu.core_type<tc>, window_params = [{transform_indices = @transform_0, window_bounds = array<i64: 1, 1>}, {transform_indices = @transform_1, window_bounds = array<i64: 1, 1>}, {transform_indices = @transform_2, window_bounds = array<i64: 8, 512>}, {transform_indices = @transform_3, window_bounds = array<i64: 8, 512>}]} {
    %c0 = arith.constant 0 : index
    %c0_0 = arith.constant 0 : index
    %0 = memref.load %arg1[%c0, %c0_0] : memref<1x1xf32, #tpu.memory_space<smem>>
    %c0_1 = arith.constant 0 : index
    %c0_2 = arith.constant 0 : index
    %1 = memref.load %arg2[%c0_1, %c0_2] : memref<1x1xf32, #tpu.memory_space<smem>>
    %c0_3 = arith.constant 0 : index
    %c0_4 = arith.constant 0 : index
    %2 = vector.load %arg3[%c0_3, %c0_4] : memref<8x512xf32, #tpu.memory_space<vmem>>, vector<8x512xf32>
    %3 = vector.broadcast %0 : f32 to vector<8x512xf32>
    %4 = arith.mulf %3, %2 : vector<8x512xf32>
    %5 = vector.broadcast %1 : f32 to vector<8x512xf32>
    %6 = arith.addf %4, %5 : vector<8x512xf32>
    %c0_5 = arith.constant 0 : index
    %c0_6 = arith.constant 0 : index
    %7 = vector.load %arg4[%c0_5, %c0_6] : memref<8x512xf32, #tpu.memory_space<vmem>>, vector<8x512xf32>
    tpu.vector_store %arg4[%c0_5, %c0_6], %6 {strides = array<i32>} : memref<8x512xf32, #tpu.memory_space<vmem>>, vector<8x512xf32>,
    return
  }
  func.func @transform_0(%arg0: i32) -> (i32, i32) {
    %c0_i32 = arith.constant 0 : i32
    %c0_i32_0 = arith.constant 0 : i32
    %c0_i32_1 = arith.constant 0 : i32
    return %c0_i32, %c0_i32_0 : i32, i32
  }
  func.func @transform_1(%arg0: i32) -> (i32, i32) {
    %c0_i32 = arith.constant 0 : i32
    %c0_i32_0 = arith.constant 0 : i32
    %c0_i32_1 = arith.constant 0 : i32
    return %c0_i32, %c0_i32_0 : i32, i32
  }
  func.func @transform_2(%arg0: i32) -> (i32, i32) {
    %c0_i32 = arith.constant 0 : i32
    %c0_i32_0 = arith.constant 0 : i32
    return %arg0, %c0_i32 : i32, i32
  }
  func.func @transform_3(%arg0: i32) -> (i32, i32) {
    %c0_i32 = arith.constant 0 : i32
    %c0_i32_0 = arith.constant 0 : i32
    return %arg0, %c0_i32 : i32, i32
  }
}

</mosaic_0001>

<bundles_post_ra>
// kernel: tpu_custom_call.1
= control target key start
LH: loop header
LB: loop body
LE: loop exit
PB: predicated region body
PF: predicated region fallthrough
CT: control target
= control target key end

     0   :  { %10 = vsyncpa [#allocation5], 0  ;;  %s156_s0 = inlined_call_operand.<no memory space> [shape: f32[1,1], index: 0, kind: input, shape index: {}]   ;;  %s157_s1 = inlined_call_operand.<no memory space> [shape: f32[1,1], index: 1, kind: input, shape index: {}]   ;;  %s158_s2 = inlined_call_operand.hbm [shape: f32[8,512], index: 2, kind: input, shape index: {}]   ;;  %s159_s3 = inlined_call_operand.hbm [shape: f32[8,512], index: 3, kind: output, shape index: {}]  }
   0x1   :  { %11 = vsyncpa [#allocation6], 0  ;;  %s21_s14 = sshll.u32 %s158_s2, 4  ;;  %s122_s15 = smov [#allocation4]   ;;  %s22_s14 = int_to_ptr.hbm [resolvable:$true] %s21_s14 }
   0x2   :  { %s23_s16 = sshll.u32 %s122_s15, 4  ;;  %s24_s16 = int_to_ptr.vmem [resolvable:$true] %s23_s16 }
   0x3   :  { %26 = dma.hbm_to_vmem [thread:$0]  %s22_s14, 512, %s24_s16, [#allocation5]  }
   0x4   :  { %118 = dma.done.wait [#allocation5], 512  }
   0x5   :  { %119 = vsyncadd [#allocation5], 4294966784  ;;  %v37_v0 = vstv %s156_s0  ;;  %v33_v1 = vld [vmem:[#allocation4] sm:$0xff]  ;;  %v42_v2 = vstv %s157_s1  ;;  %v34_v3 = vld [vmem:[#allocation4 + $0x8] sm:$0xff]  ;;  %s123_s2 = smov [#allocation7]   ;;  %s58_s0 = sshll.u32 %s159_s3, 4  ;;  %s59_s0 = int_to_ptr.hbm [resolvable:$true] %s58_s0 }
   0x6   :  { %v35_v4 = vld [vmem:[#allocation4 + $0x10] sm:$0xff]  ;;  %v38_v5 = vmul.f32 %v37_v0, %v33_v1  ;;  %v39_v6 = vmul.f32 %v37_v0, %v34_v3  ;;  %v36_v8 = vld [vmem:[#allocation4 + $0x18] sm:$0xff]  ;;  %s56_s21 = sshll.u32 %s123_s2, 4  ;;  %s57_s21 = int_to_ptr.vmem [resolvable:$true] %s56_s21 }
   0x7   :  { %v40_v7 = vmul.f32 %v37_v0, %v35_v4  ;;  %v41_v9 = vmul.f32 %v37_v0, %v36_v8 }
   0x8   :  { %v43_v10 = vadd.f32 %v42_v2, %v38_v5  ;;  %v44_v11 = vadd.f32 %v42_v2, %v39_v6 }
   0x9   :  { %v45_v12 = vadd.f32 %v42_v2, %v40_v7  ;;  %v46_v13 = vadd.f32 %v42_v2, %v41_v9 }
   0xa   :  { %47 = vst [vmem:[#allocation7] sm:$0xff] %v43_v10 }
   0xb   :  { %48 = vst [vmem:[#allocation7 + $0x8] sm:$0xff] %v44_v11 }
   0xc   :  { %49 = vst [vmem:[#allocation7 + $0x10] sm:$0xff] %v45_v12 }
   0xd   :  { %50 = vst [vmem:[#allocation7 + $0x18] sm:$0xff] %v46_v13 }
   0xe   :  { %61 = dma.vmem_to_hbm [thread:$0]  %s57_s21, 512, %s59_s0, [#allocation6]  }
   0xf   :  { %120 = dma.done.wait [#allocation6], 512  }
  0x10   :  { %121 = vsyncadd [#allocation6], 4294966784 }
  0x11   :  { %66 = vsyncpa [#allocation5], 1 }
  0x12   :  { %67 = vsyncpa [#allocation6], 1 }

</bundles_post_ra>
